<compile_context>
chip_gen: v5e
topology: v5e:2x2
jax: 0.10.0
libtpu: 0.0.40
codegen_flags: <defaults>
</compile_context>

<pallas_src>
import math

import numpy as np
import jax
import jax.numpy as jnp
from jax.experimental import pallas as pl
from jax.experimental.pallas import tpu as pltpu


def _encoder_attn_kernel(qc_ref, k_ref, v_ref, m_ref, hm_ref,
                         wq_ref, bq_ref, w1_ref, b1_ref,
                         w2_ref, b2_ref, w3_ref, b3_ref,
                         cte_ref, attn_ref):
    f32 = jnp.float32
    tb, S, d_model = k_ref.shape

    # Fused query projection: (key_linear ∘ linears[0]) with 1/sqrt(d_k) folded in.
    Q = jnp.dot(qc_ref[...], wq_ref[...], preferred_element_type=f32) + bq_ref[...]    # (tb, dm)

    # K / V projections on a flattened (tb*S, d_model) slab (good MXU row count).
    kf = k_ref[...].reshape(tb * S, d_model)
    K = (jnp.dot(kf, w1_ref[...], preferred_element_type=f32) + b1_ref[...]
         ).reshape(tb, S, d_model)
    vf = v_ref[...].reshape(tb * S, d_model)
    V = (jnp.dot(vf, w2_ref[...], preferred_element_type=f32) + b2_ref[...]
         ).reshape(tb, S, d_model)

    # Head-batched scores without per-head slicing: zero out the columns that do not
    # belong to each head, then contract the full feature axis.
    hm = hm_ref[...]                                    # (h, d_model) 0/1 head selector
    Qh = Q[:, None, :] * hm[None, :, :]                 # (tb, h, d_model)

    # scores[b,hh,s] = sum_d Qh[b,hh,d] * K[b,s,d]  (already scaled)
    scores = jnp.einsum('bhd,bsd->bhs', Qh, K, preferred_element_type=f32)   # (tb, h, S)
    scores = jnp.where(m_ref[...][:, None, :] == 0.0, -1e9, scores)

    # softmax over S (lane reduce), EUP reciprocal for the normalization
    m_max = jnp.max(scores, axis=-1, keepdims=True)
    e = jnp.exp(scores - m_max)
    l = jnp.sum(e, axis=-1, keepdims=True)
    p = e * pl.reciprocal(l, approx=True)               # (tb, h, S)
    attn_ref[...] = p

    # ctx[b,d] = sum_s p[b, head(d), s] * V[b,s,d]
    ctx_h = jnp.einsum('bhs,bsd->bhd', p, V, preferred_element_type=f32)     # (tb, h, dm)
    ctx = jnp.sum(ctx_h * hm[None, :, :], axis=1)                            # (tb, dm)

    cte_ref[...] = jnp.dot(ctx, w3_ref[...], preferred_element_type=f32) + b3_ref[...]


def _choose_tb(B, S, d_model):
    """Batch-rows per grid step: target >=256 rows in the flattened projection
    matmuls, cap per-step f32 block at ~4 MiB so double-buffered K/V plus the
    projected intermediates fit the default scoped VMEM limit (v7x-safe)."""
    tb = max(1, pl.cdiv(256, S))
    cap = max(1, (4 * 1024 * 1024) // (S * d_model * 4))
    tb = min(tb, cap)
    if tb >= B:
        return B
    # blocks smaller than the batch must keep 2-D operands (q_cat/mask/ct_e)
    # sublane-aligned, so use a multiple of 8
    return max(8, (tb // 8) * 8)


def encoder_attention_forward(query, key, value, mask, sum_temporal_srcs, sum_k_emb,
                              params, *, h):
    B, S, d_model = key.shape
    d_emb = sum_k_emb.shape[1]
    d_k = d_model // h
    d_in = d_model + d_emb
    f32 = jnp.float32

    # --- offline weight fusion: key_linear ∘ linears[0], with 1/sqrt(d_k) folded in ---
    scale = 1.0 / math.sqrt(d_k)
    wq = (params["wkl_t"] @ params["w0_t"]) * scale                    # (d_in, d_model)
    bq = (params["bkl"] @ params["w0_t"] + params["b0"]) * scale       # (1, d_model)

    # head selector: headmask[hh, d] = 1 iff feature d belongs to head hh
    headmask = (jnp.arange(d_model)[None, :] // d_k ==
                jnp.arange(h)[:, None]).astype(f32)                    # (h, d_model)

    q_cat = jnp.concatenate([query, sum_k_emb], axis=1).astype(f32)    # (B, d_in)
    mask_f = mask.astype(f32)
    key_f = key.astype(f32)
    value_f = value.astype(f32)

    tb = _choose_tb(B, S, d_model)
    Bp = pl.cdiv(B, tb) * tb
    if Bp != B:
        pad = Bp - B
        q_cat = jnp.pad(q_cat, ((0, pad), (0, 0)))
        key_f = jnp.pad(key_f, ((0, pad), (0, 0), (0, 0)))
        value_f = jnp.pad(value_f, ((0, pad), (0, 0), (0, 0)))
        mask_f = jnp.pad(mask_f, ((0, pad), (0, 0)))       # all-zero mask rows are safe

    weights = [headmask, wq, bq,
               params["w1_t"], params["b1"],
               params["w2_t"], params["b2"],
               params["w3_t"], params["b3"]]

    def full_spec(w):
        nd = w.ndim
        return pl.BlockSpec(w.shape, lambda b, nd=nd: (0,) * nd)

    in_specs = [
        pl.BlockSpec((tb, d_in),        lambda b: (b, 0)),     # q_cat
        pl.BlockSpec((tb, S, d_model),  lambda b: (b, 0, 0)),  # key
        pl.BlockSpec((tb, S, d_model),  lambda b: (b, 0, 0)),  # value
        pl.BlockSpec((tb, S),           lambda b: (b, 0)),     # mask
    ] + [full_spec(w) for w in weights]

    out_specs = [
        pl.BlockSpec((tb, d_model), lambda b: (b, 0)),     # ct_e
        pl.BlockSpec((tb, h, S),    lambda b: (b, 0, 0)),  # attn
    ]

    ct_e, attn = pl.pallas_call(
        _encoder_attn_kernel,
        out_shape=(jax.ShapeDtypeStruct((Bp, d_model), f32),
                   jax.ShapeDtypeStruct((Bp, h, S), f32)),
        grid_spec=pltpu.PrefetchScalarGridSpec(
            num_scalar_prefetch=0,
            grid=(Bp // tb,),
            in_specs=in_specs,
            out_specs=out_specs,
        ),
        compiler_params=pltpu.CompilerParams(dimension_semantics=("parallel",)),
    )(q_cat, key_f, value_f, mask_f, *weights)

    if Bp != B:
        ct_e = ct_e[:B]
        attn = attn[:B]
    return ct_e, attn, sum_temporal_srcs


def reference_forward(query, key, value, mask, sum_k_emb, params, *, h):
    """Pure-JAX mirror of the PyTorch forward (eval mode), unfused weights."""
    B, S, d_model = key.shape
    d_k = d_model // h
    q = jnp.concatenate([query, sum_k_emb], axis=1) @ params["wkl_t"] + params["bkl"]
    Q = (q @ params["w0_t"] + params["b0"]).reshape(B, 1, h, d_k).transpose(0, 2, 1, 3)
    K = (key @ params["w1_t"] + params["b1"]).reshape(B, S, h, d_k).transpose(0, 2, 1, 3)
    V = (value @ params["w2_t"] + params["b2"]).reshape(B, S, h, d_k).transpose(0, 2, 1, 3)
    scores = jnp.einsum("bhqd,bhkd->bhqk", Q, K) / math.sqrt(d_k)
    m = mask.astype(jnp.float32)[:, None, None, :]
    scores = jnp.where(m == 0.0, -1e9, scores)
    p = jax.nn.softmax(scores, axis=-1)                                     # (B, h, 1, S)
    x = jnp.einsum("bhqk,bhkd->bhqd", p, V)
    x = x.transpose(0, 2, 1, 3).reshape(B, 1, d_model)
    ct_e = (x @ params["w3_t"] + params["b3"]).squeeze(1)
    return ct_e, p.squeeze(2)


if __name__ == "__main__":
    # small deterministic shapes
    B, S = 2, 8
    h, d_model, d_emb = 4, 32, 16

    key0 = jax.random.PRNGKey(0)
    ks = jax.random.split(key0, 16)

    def rand(k, shape, scale=0.1):
        return (scale * jax.random.normal(k, shape)).astype(jnp.float32)

    # parameters (Linear weights stored pre-transposed: (in, out); biases as (1, out))
    params = {
        "wkl_t": rand(ks[0], (d_model + d_emb, d_model)),
        "bkl":   rand(ks[1], (1, d_model)),
        "w0_t":  rand(ks[2], (d_model, d_model)),
        "b0":    rand(ks[3], (1, d_model)),
        "w1_t":  rand(ks[4], (d_model, d_model)),
        "b1":    rand(ks[5], (1, d_model)),
        "w2_t":  rand(ks[6], (d_model, d_model)),
        "b2":    rand(ks[7], (1, d_model)),
        "w3_t":  rand(ks[8], (d_model, d_model)),
        "b3":    rand(ks[9], (1, d_model)),
    }

    query = rand(ks[10], (B, d_model), scale=1.0)
    enc_key = rand(ks[11], (B, S, d_model), scale=1.0)
    enc_val = rand(ks[12], (B, S, d_model), scale=1.0)
    sum_k_emb = rand(ks[13], (B, d_emb), scale=1.0)
    sum_temporal_srcs = rand(ks[14], (B, S), scale=1.0)

    # mask: 1 = keep, 0 = padded; mask out the last two positions of batch 1
    mask = jnp.ones((B, S), dtype=jnp.float32)
    mask = mask.at[1, -2:].set(0.0)

    ct_e, attn, sts = encoder_attention_forward(
        query, enc_key, enc_val, mask, sum_temporal_srcs, sum_k_emb, params, h=h)
    jax.block_until_ready((ct_e, attn, sts))

    ct_e_ref, attn_ref = reference_forward(query, enc_key, enc_val, mask, sum_k_emb, params, h=h)

    # slightly loose tolerance: pl.reciprocal(approx=True) in the softmax normalization
    np.testing.assert_allclose(np.asarray(ct_e), np.asarray(ct_e_ref), rtol=2e-3, atol=2e-3)
    np.testing.assert_allclose(np.asarray(attn), np.asarray(attn_ref), rtol=2e-3, atol=2e-3)
    assert sts.shape == sum_temporal_srcs.shape

    print("KERNEL_OK")
</pallas_src>

<mosaic_0001>
module attributes {stable_mosaic.version = 11 : i64} {
  func.func @_encoder_attn_kernel(%arg0: i32, %arg1: memref<2x48xf32, #tpu.memory_space<vmem>>, %arg2: memref<2x8x32xf32, #tpu.memory_space<vmem>>, %arg3: memref<2x8x32xf32, #tpu.memory_space<vmem>>, %arg4: memref<2x8xf32, #tpu.memory_space<vmem>>, %arg5: memref<4x32xf32, #tpu.memory_space<vmem>>, %arg6: memref<48x32xf32, #tpu.memory_space<vmem>>, %arg7: memref<1x32xf32, #tpu.memory_space<vmem>>, %arg8: memref<32x32xf32, #tpu.memory_space<vmem>>, %arg9: memref<1x32xf32, #tpu.memory_space<vmem>>, %arg10: memref<32x32xf32, #tpu.memory_space<vmem>>, %arg11: memref<1x32xf32, #tpu.memory_space<vmem>>, %arg12: memref<32x32xf32, #tpu.memory_space<vmem>>, %arg13: memref<1x32xf32, #tpu.memory_space<vmem>>, %arg14: memref<2x32xf32, #tpu.memory_space<vmem>>, %arg15: memref<2x4x8xf32, #tpu.memory_space<vmem>>) attributes {dimension_semantics = [#tpu.dimension_semantics<parallel>], iteration_bounds = array<i64: 1>, scalar_prefetch = 0 : i64, scratch_operands = 0 : i64, tpu.core_type = #tpu.core_type<tc>, window_params = [{transform_indices = @transform_0, window_bounds = array<i64: 2, 48>}, {transform_indices = @transform_1, window_bounds = array<i64: 2, 8, 32>}, {transform_indices = @transform_2, window_bounds = array<i64: 2, 8, 32>}, {transform_indices = @transform_3, window_bounds = array<i64: 2, 8>}, {pipeline_mode = #tpu.pipeline_mode<synchronous>, transform_indices = @transform_4, window_bounds = array<i64: 4, 32>}, {pipeline_mode = #tpu.pipeline_mode<synchronous>, transform_indices = @transform_5, window_bounds = array<i64: 48, 32>}, {pipeline_mode = #tpu.pipeline_mode<synchronous>, transform_indices = @transform_6, window_bounds = array<i64: 1, 32>}, {pipeline_mode = #tpu.pipeline_mode<synchronous>, transform_indices = @transform_7, window_bounds = array<i64: 32, 32>}, {pipeline_mode = #tpu.pipeline_mode<synchronous>, transform_indices = @transform_8, window_bounds = array<i64: 1, 32>}, {pipeline_mode = #tpu.pipeline_mode<synchronous>, transform_indices = @transform_9, window_bounds = array<i64: 32, 32>}, {pipeline_mode = #tpu.pipeline_mode<synchronous>, transform_indices = @transform_10, window_bounds = array<i64: 1, 32>}, {pipeline_mode = #tpu.pipeline_mode<synchronous>, transform_indices = @transform_11, window_bounds = array<i64: 32, 32>}, {pipeline_mode = #tpu.pipeline_mode<synchronous>, transform_indices = @transform_12, window_bounds = array<i64: 1, 32>}, {transform_indices = @transform_13, window_bounds = array<i64: 2, 32>}, {transform_indices = @transform_14, window_bounds = array<i64: 2, 4, 8>}]} {
    %c0 = arith.constant 0 : index
    %c0_0 = arith.constant 0 : index
    %0 = vector.load %arg1[%c0, %c0_0] : memref<2x48xf32, #tpu.memory_space<vmem>>, vector<2x48xf32>
    %c0_1 = arith.constant 0 : index
    %c0_2 = arith.constant 0 : index
    %1 = vector.load %arg6[%c0_1, %c0_2] : memref<48x32xf32, #tpu.memory_space<vmem>>, vector<48x32xf32>
    %cst = arith.constant dense<0.000000e+00> : vector<2x32xf32>
    %2 = tpu.matmul %0, %1, %cst {dimension_numbers = #tpu.dot_dimension_numbers<[1], [0], [0], [1], [0, 0, 1, 1], [], []>} : vector<2x48xf32>, vector<48x32xf32>, vector<2x32xf32> -> vector<2x32xf32>
    %c0_3 = arith.constant 0 : index
    %c0_4 = arith.constant 0 : index
    %3 = vector.load %arg7[%c0_3, %c0_4] : memref<1x32xf32, #tpu.memory_space<vmem>>, vector<1x32xf32>
    %4 = vector.broadcast %3 : vector<1x32xf32> to vector<2x32xf32>
    %5 = arith.addf %2, %4 : vector<2x32xf32>
    %c0_5 = arith.constant 0 : index
    %c0_6 = arith.constant 0 : index
    %c0_7 = arith.constant 0 : index
    %6 = vector.load %arg2[%c0_5, %c0_6, %c0_7] : memref<2x8x32xf32, #tpu.memory_space<vmem>>, vector<2x8x32xf32>
    %7 = vector.shape_cast %6 : vector<2x8x32xf32> to vector<16x32xf32>
    %c0_8 = arith.constant 0 : index
    %c0_9 = arith.constant 0 : index
    %8 = vector.load %arg8[%c0_8, %c0_9] : memref<32x32xf32, #tpu.memory_space<vmem>>, vector<32x32xf32>
    %cst_10 = arith.constant dense<0.000000e+00> : vector<16x32xf32>
    %9 = tpu.matmul %7, %8, %cst_10 {dimension_numbers = #tpu.dot_dimension_numbers<[1], [0], [0], [1], [0, 0, 1, 1], [], []>} : vector<16x32xf32>, vector<32x32xf32>, vector<16x32xf32> -> vector<16x32xf32>
    %c0_11 = arith.constant 0 : index
    %c0_12 = arith.constant 0 : index
    %10 = vector.load %arg9[%c0_11, %c0_12] : memref<1x32xf32, #tpu.memory_space<vmem>>, vector<1x32xf32>
    %11 = vector.broadcast %10 : vector<1x32xf32> to vector<16x32xf32>
    %12 = arith.addf %9, %11 : vector<16x32xf32>
    %13 = vector.shape_cast %12 : vector<16x32xf32> to vector<2x8x32xf32>
    %c0_13 = arith.constant 0 : index
    %c0_14 = arith.constant 0 : index
    %c0_15 = arith.constant 0 : index
    %14 = vector.load %arg3[%c0_13, %c0_14, %c0_15] : memref<2x8x32xf32, #tpu.memory_space<vmem>>, vector<2x8x32xf32>
    %15 = vector.shape_cast %14 : vector<2x8x32xf32> to vector<16x32xf32>
    %c0_16 = arith.constant 0 : index
    %c0_17 = arith.constant 0 : index
    %16 = vector.load %arg10[%c0_16, %c0_17] : memref<32x32xf32, #tpu.memory_space<vmem>>, vector<32x32xf32>
    %cst_18 = arith.constant dense<0.000000e+00> : vector<16x32xf32>
    %17 = tpu.matmul %15, %16, %cst_18 {dimension_numbers = #tpu.dot_dimension_numbers<[1], [0], [0], [1], [0, 0, 1, 1], [], []>} : vector<16x32xf32>, vector<32x32xf32>, vector<16x32xf32> -> vector<16x32xf32>
    %c0_19 = arith.constant 0 : index
    %c0_20 = arith.constant 0 : index
    %18 = vector.load %arg11[%c0_19, %c0_20] : memref<1x32xf32, #tpu.memory_space<vmem>>, vector<1x32xf32>
    %19 = vector.broadcast %18 : vector<1x32xf32> to vector<16x32xf32>
    %20 = arith.addf %17, %19 : vector<16x32xf32>
    %21 = vector.shape_cast %20 : vector<16x32xf32> to vector<2x8x32xf32>
    %c0_21 = arith.constant 0 : index
    %c0_22 = arith.constant 0 : index
    %22 = vector.load %arg5[%c0_21, %c0_22] : memref<4x32xf32, #tpu.memory_space<vmem>>, vector<4x32xf32>
    %23 = vector.shape_cast %5 : vector<2x32xf32> to vector<2x1x32xf32>
    %24 = vector.shape_cast %22 : vector<4x32xf32> to vector<1x4x32xf32>
    %25 = vector.broadcast %23 : vector<2x1x32xf32> to vector<2x4x32xf32>
    %26 = vector.broadcast %24 : vector<1x4x32xf32> to vector<2x4x32xf32>
    %27 = arith.mulf %25, %26 : vector<2x4x32xf32>
    "tpu.trace_start"() <{level = 10 : i32, message = "bhd,bsd->bhs"}> : () -> ()
    %cst_23 = arith.constant dense<0.000000e+00> : vector<2x4x8xf32>
    %28 = tpu.matmul %27, %13, %cst_23 {dimension_numbers = #tpu.dot_dimension_numbers<[2], [2], [1], [1], [0, 0, 0, 1, 1, 1], [0], [0]>} : vector<2x4x32xf32>, vector<2x8x32xf32>, vector<2x4x8xf32> -> vector<2x4x8xf32>
    "tpu.trace_stop"() : () -> ()
    %c0_24 = arith.constant 0 : index
    %c0_25 = arith.constant 0 : index
    %29 = vector.load %arg4[%c0_24, %c0_25] : memref<2x8xf32, #tpu.memory_space<vmem>>, vector<2x8xf32>
    %30 = vector.shape_cast %29 : vector<2x8xf32> to vector<2x1x8xf32>
    %cst_26 = arith.constant 0.000000e+00 : f32
    %31 = vector.broadcast %cst_26 : f32 to vector<2x1x8xf32>
    %32 = arith.cmpf oeq, %30, %31 : vector<2x1x8xf32>
    %cst_27 = arith.constant -1.000000e+09 : f32
    %33 = vector.shape_cast %32 : vector<2x1x8xi1> to vector<2x1x8xi1>
    %34 = vector.broadcast %33 : vector<2x1x8xi1> to vector<2x4x8xi1>
    %35 = vector.broadcast %cst_27 : f32 to vector<2x4x8xf32>
    %36 = arith.select %34, %35, %28 : vector<2x4x8xi1>, vector<2x4x8xf32>
    %cst_28 = arith.constant dense<0xFF800000> : vector<2x4xf32>
    %37 = vector.multi_reduction <maximumf>, %36, %cst_28 [2] : vector<2x4x8xf32> to vector<2x4xf32>
    %38 = vector.shape_cast %37 : vector<2x4xf32> to vector<2x4x1xf32>
    %39 = vector.broadcast %38 : vector<2x4x1xf32> to vector<2x4x8xf32>
    %40 = arith.subf %36, %39 : vector<2x4x8xf32>
    %41 = math.exp %40 : vector<2x4x8xf32>
    %cst_29 = arith.constant dense<0.000000e+00> : vector<2x4xf32>
    %42 = vector.multi_reduction <add>, %41, %cst_29 [2] : vector<2x4x8xf32> to vector<2x4xf32>
    %43 = vector.shape_cast %42 : vector<2x4xf32> to vector<2x4x1xf32>
    %44 = tpu.reciprocal %43 {approx = true} : vector<2x4x1xf32> -> vector<2x4x1xf32>
    %45 = vector.broadcast %44 : vector<2x4x1xf32> to vector<2x4x8xf32>
    %46 = arith.mulf %41, %45 : vector<2x4x8xf32>
    %c0_30 = arith.constant 0 : index
    %c0_31 = arith.constant 0 : index
    %c0_32 = arith.constant 0 : index
    %47 = vector.load %arg15[%c0_30, %c0_31, %c0_32] : memref<2x4x8xf32, #tpu.memory_space<vmem>>, vector<2x4x8xf32>
    tpu.vector_store %arg15[%c0_30, %c0_31, %c0_32], %46 {strides = array<i32>} : memref<2x4x8xf32, #tpu.memory_space<vmem>>, vector<2x4x8xf32>,
    "tpu.trace_start"() <{level = 10 : i32, message = "bhs,bsd->bhd"}> : () -> ()
    %cst_33 = arith.constant dense<0.000000e+00> : vector<2x4x32xf32>
    %48 = tpu.matmul %46, %21, %cst_33 {dimension_numbers = #tpu.dot_dimension_numbers<[2], [1], [1], [2], [0, 0, 0, 1, 1, 2], [0], [0]>} : vector<2x4x8xf32>, vector<2x8x32xf32>, vector<2x4x32xf32> -> vector<2x4x32xf32>
    "tpu.trace_stop"() : () -> ()
    %49 = vector.shape_cast %22 : vector<4x32xf32> to vector<1x4x32xf32>
    %50 = vector.broadcast %49 : vector<1x4x32xf32> to vector<2x4x32xf32>
    %51 = arith.mulf %48, %50 : vector<2x4x32xf32>
    %cst_34 = arith.constant dense<0.000000e+00> : vector<2x32xf32>
    %52 = vector.multi_reduction <add>, %51, %cst_34 [1] : vector<2x4x32xf32> to vector<2x32xf32>
    %c0_35 = arith.constant 0 : index
    %c0_36 = arith.constant 0 : index
    %53 = vector.load %arg12[%c0_35, %c0_36] : memref<32x32xf32, #tpu.memory_space<vmem>>, vector<32x32xf32>
    %cst_37 = arith.constant dense<0.000000e+00> : vector<2x32xf32>
    %54 = tpu.matmul %52, %53, %cst_37 {dimension_numbers = #tpu.dot_dimension_numbers<[1], [0], [0], [1], [0, 0, 1, 1], [], []>} : vector<2x32xf32>, vector<32x32xf32>, vector<2x32xf32> -> vector<2x32xf32>
    %c0_38 = arith.constant 0 : index
    %c0_39 = arith.constant 0 : index
    %55 = vector.load %arg13[%c0_38, %c0_39] : memref<1x32xf32, #tpu.memory_space<vmem>>, vector<1x32xf32>
    %56 = vector.broadcast %55 : vector<1x32xf32> to vector<2x32xf32>
    %57 = arith.addf %54, %56 : vector<2x32xf32>
    %c0_40 = arith.constant 0 : index
    %c0_41 = arith.constant 0 : index
    %58 = vector.load %arg14[%c0_40, %c0_41] : memref<2x32xf32, #tpu.memory_space<vmem>>, vector<2x32xf32>
    tpu.vector_store %arg14[%c0_40, %c0_41], %57 {strides = array<i32>} : memref<2x32xf32, #tpu.memory_space<vmem>>, vector<2x32xf32>,
    return
  }
  func.func @transform_0(%arg0: i32) -> (i32, i32) {
    %c0_i32 = arith.constant 0 : i32
    %c0_i32_0 = arith.constant 0 : i32
    return %arg0, %c0_i32 : i32, i32
  }
  func.func @transform_1(%arg0: i32) -> (i32, i32, i32) {
    %c0_i32 = arith.constant 0 : i32
    %c0_i32_0 = arith.constant 0 : i32
    %c0_i32_1 = arith.constant 0 : i32
    return %arg0, %c0_i32, %c0_i32_0 : i32, i32, i32
  }
  func.func @transform_2(%arg0: i32) -> (i32, i32, i32) {
    %c0_i32 = arith.constant 0 : i32
    %c0_i32_0 = arith.constant 0 : i32
    %c0_i32_1 = arith.constant 0 : i32
    return %arg0, %c0_i32, %c0_i32_0 : i32, i32, i32
  }
  func.func @transform_3(%arg0: i32) -> (i32, i32) {
    %c0_i32 = arith.constant 0 : i32
    %c0_i32_0 = arith.constant 0 : i32
    return %arg0, %c0_i32 : i32, i32
  }
  func.func @transform_4(%arg0: i32) -> (i32, i32) {
    %c0_i32 = arith.constant 0 : i32
    %c0_i32_0 = arith.constant 0 : i32
    %c0_i32_1 = arith.constant 0 : i32
    return %c0_i32, %c0_i32_0 : i32, i32
  }
  func.func @transform_5(%arg0: i32) -> (i32, i32) {
    %c0_i32 = arith.constant 0 : i32
    %c0_i32_0 = arith.constant 0 : i32
    %c0_i32_1 = arith.constant 0 : i32
    return %c0_i32, %c0_i32_0 : i32, i32
  }
  func.func @transform_6(%arg0: i32) -> (i32, i32) {
    %c0_i32 = arith.constant 0 : i32
    %c0_i32_0 = arith.constant 0 : i32
    %c0_i32_1 = arith.constant 0 : i32
    return %c0_i32, %c0_i32_0 : i32, i32
  }
  func.func @transform_7(%arg0: i32) -> (i32, i32) {
    %c0_i32 = arith.constant 0 : i32
    %c0_i32_0 = arith.constant 0 : i32
    %c0_i32_1 = arith.constant 0 : i32
    return %c0_i32, %c0_i32_0 : i32, i32
  }
  func.func @transform_8(%arg0: i32) -> (i32, i32) {
    %c0_i32 = arith.constant 0 : i32
    %c0_i32_0 = arith.constant 0 : i32
    %c0_i32_1 = arith.constant 0 : i32
    return %c0_i32, %c0_i32_0 : i32, i32
  }
  func.func @transform_9(%arg0: i32) -> (i32, i32) {
    %c0_i32 = arith.constant 0 : i32
    %c0_i32_0 = arith.constant 0 : i32
    %c0_i32_1 = arith.constant 0 : i32
    return %c0_i32, %c0_i32_0 : i32, i32
  }
  func.func @transform_10(%arg0: i32) -> (i32, i32) {
    %c0_i32 = arith.constant 0 : i32
    %c0_i32_0 = arith.constant 0 : i32
    %c0_i32_1 = arith.constant 0 : i32
    return %c0_i32, %c0_i32_0 : i32, i32
  }
  func.func @transform_11(%arg0: i32) -> (i32, i32) {
    %c0_i32 = arith.constant 0 : i32
    %c0_i32_0 = arith.constant 0 : i32
    %c0_i32_1 = arith.constant 0 : i32
    return %c0_i32, %c0_i32_0 : i32, i32
  }
  func.func @transform_12(%arg0: i32) -> (i32, i32) {
    %c0_i32 = arith.constant 0 : i32
    %c0_i32_0 = arith.constant 0 : i32
    %c0_i32_1 = arith.constant 0 : i32
    return %c0_i32, %c0_i32_0 : i32, i32
  }
  func.func @transform_13(%arg0: i32) -> (i32, i32) {
    %c0_i32 = arith.constant 0 : i32
    %c0_i32_0 = arith.constant 0 : i32
    return %arg0, %c0_i32 : i32, i32
  }
  func.func @transform_14(%arg0: i32) -> (i32, i32, i32) {
    %c0_i32 = arith.constant 0 : i32
    %c0_i32_0 = arith.constant 0 : i32
    %c0_i32_1 = arith.constant 0 : i32
    return %arg0, %c0_i32, %c0_i32_0 : i32, i32, i32
  }
}

</mosaic_0001>

<bundles_post_ra>
// kernel: tpu_custom_call.1
= control target key start
LH: loop header
LB: loop body
LE: loop exit
PB: predicated region body
PF: predicated region fallthrough
CT: control target
= control target key end

     0   :  { %20 = vsyncpa [#allocation3], 0  ;;  %s835_s0 = inlined_call_operand.hbm [shape: f32[2,48], index: 0, kind: input, shape index: {}]   ;;  %s836_s1 = inlined_call_operand.vmem [shape: f32[2,8,32], index: 1, kind: input, shape index: {}]   ;;  %s837_s2 = inlined_call_operand.hbm [shape: f32[2,8,32], index: 2, kind: input, shape index: {}]   ;;  %s838_s3 = inlined_call_operand.vmem [shape: f32[2,8], index: 3, kind: input, shape index: {}]   ;;  %s839_s4 = inlined_call_operand.hbm [shape: f32[4,32], index: 4, kind: input, shape index: {}]   ;;  %s840_s5 = inlined_call_operand.vmem [shape: f32[48,32], index: 5, kind: input, shape index: {}]   ;;  %s841_s6 = inlined_call_operand.vmem [shape: f32[1,32], index: 6, kind: input, shape index: {}]   ;;  %s842_s7 = inlined_call_operand.vmem [shape: f32[32,32], index: 7, kind: input, shape index: {}]   ;;  %s843_s8 = inlined_call_operand.vmem [shape: f32[1,32], index: 8, kind: input, shape index: {}]   ;;  %s844_s9 = inlined_call_operand.vmem [shape: f32[32,32], index: 9, kind: input, shape index: {}]   ;;  %s845_s10 = inlined_call_operand.vmem [shape: f32[1,32], index: 10, kind: input, shape index: {}]   ;;  %s846_s11 = inlined_call_operand.hbm [shape: f32[32,32], index: 11, kind: input, shape index: {}]   ;;  %s847_s12 = inlined_call_operand.vmem [shape: f32[1,32], index: 12, kind: input, shape index: {}]   ;;  %s848_s13 = inlined_call_operand.hbm [shape: f32[2,32], index: 13, kind: output, shape index: {0}]   ;;  %s849_s14 = inlined_call_operand.hbm [shape: f32[2,4,8], index: 14, kind: output, shape index: {1}]  }
   0x1   :  { %21 = vsyncpa [#allocation6], 0 }
   0x2   :  { %22 = vsyncpa [#allocation9], 0 }
   0x3   :  { %23 = vsyncpa [#allocation4], 0  ;;  %s42_s15 = sshll.u32 %s837_s2, 4  ;;  %s43_s15 = int_to_ptr.hbm [resolvable:$true] %s42_s15 }
   0x4   :  { %24 = vsyncpa [#allocation12], 0  ;;  %s647_s16 = smov [#allocation5]   ;;  %s30_s20 = sshll.u32 %s835_s0, 4  ;;  %s31_s20 = int_to_ptr.hbm [resolvable:$true] %s30_s20 }
   0x5   :  { %s44_s17 = sshll.u32 %s647_s16, 4  ;;  %s648_s21 = smov 128   ;;  %s45_s17 = int_to_ptr.vmem [resolvable:$true] %s44_s17 }
   0x6   :  { %s649_s22 = smov 8   ;;  %s650_s23 = smov [#allocation2]  }
   0x7   :  { %50 = dma.hbm_to_vmem [thread:$0]  %s43_s15, 256, %s45_s17, [#allocation6], %s648_s21, %s648_s21, %s649_s22  }
   0x8   :  { %s32_s24 = sshll.u32 %s650_s23, 4  ;;  %s58_s27 = sshll.u32 %s839_s4, 4  ;;  %s33_s24 = int_to_ptr.vmem [resolvable:$true] %s32_s24  ;;  %s59_s27 = int_to_ptr.hbm [resolvable:$true] %s58_s27 }
   0x9   :  { %35 = dma.hbm_to_vmem [thread:$0]  %s31_s20, 32, %s33_s24, [#allocation3]  }
   0xa   :  { %s80_s29 = sshll.u32 %s846_s11, 4  ;;  %s651_s30 = smov [#allocation7]   ;;  %s81_s29 = int_to_ptr.hbm [resolvable:$true] %s80_s29 }
   0xb   :  { %s60_s16 = sshll.u32 %s651_s30, 4  ;;  %s652_s0 = smov [#allocation8]   ;;  %s61_s16 = int_to_ptr.vmem [resolvable:$true] %s60_s16 }
   0xc   :  { %63 = dma.hbm_to_vmem [thread:$0]  %s59_s27, 64, %s61_s16, [#allocation6]  }
   0xd   :  { %s82_s15 = sshll.u32 %s652_s0, 4  ;;  %s83_s15 = int_to_ptr.vmem [resolvable:$true] %s82_s15 }
   0xe   :  { %88 = dma.hbm_to_vmem [thread:$0]  %s81_s29, 512, %s83_s15, [#allocation9], %s648_s21, %s648_s21, %s649_s22  }
   0xf   :  { %637 = dma.done.wait [#allocation3], 32  }
  0x10   :  { %638 = vsyncadd [#allocation3], 4294967264 }
  0x11   :  { %639 = dma.done.wait [#allocation6], 320  }
  0x12   :  { %640 = vsyncadd [#allocation6], 4294966976 }
  0x13   :  { %641 = dma.done.wait [#allocation9], 512  }
  0x14   :  { %642 = vsyncadd [#allocation9], 4294966784  ;;  %v113_v0 = vld [vmem:[%s840_s5 + $0x28] sm:$0xff]  ;;  %v147_v1 = vld [vmem:[%s842_s7 + $0x18] sm:$0xff]  ;;  %vm152_vm0 = vcmask 261120   ;;  %vm118_vm1 = vcmask 392192  }
  0x15   :  { %v112_v2 = vld [vmem:[%s840_s5 + $0x20] sm:$0xff]  ;;  %132 = vmatpush.msra.mxu0 %v113_v0  ;;  %171 = vmatpush.msra.mxu1 %v147_v1  ;;  %v146_v3 = vld [vmem:[%s842_s7 + $0x10] sm:$0xff]  ;;  %v111_v4 = vld [vmem:[%s840_s5 + $0x18] sm:$0xff]  ;;  %v653_v34 = vmov 0   ;;  %vm296_vm5 = vcmask 60416   ;;  %vm321_vm7 = vcmask 64512  }
  0x16   :  { %v145_v5 = vld [vmem:[%s842_s7 + $0x8] sm:$0xff]  ;;  %v110_v6 = vld [vmem:[%s840_s5 + $0x10] sm:$0xff]  ;;  %v144_v7 = vld [vmem:[%s842_s7] sm:$0xff]  ;;  %vm370_vm8 = vcmask 257024   ;;  %vm395_vm9 = vcmask 1041409   ;;  %s438_s30 = sshll.u32 %s849_s14, 4  ;;  %s439_s30 = int_to_ptr.hbm [resolvable:$true] %s438_s30 }
  0x17   :  { %133 = vmatpush.msra.mxu0 %v112_v2  ;;  %172 = vmatpush.msra.mxu1 %v146_v3  ;;  %v142_v8 = vld [vmem:[%s836_s1] sm:$0xff]  ;;  %v109_v9 = vld [vmem:[%s840_s5 + $0x8] sm:$0xff]  ;;  %v790_v19 = vld [vmem:[#allocation7] sm:$0xf]  ;;  %s655_s16 = smov 64   ;;  %s656_s0 = smov 4  }
  0x18   :  { %v108_v10 = vld [vmem:[%s840_s5] sm:$0xff]  ;;  %v143_v12 = vld [vmem:[%s836_s1 + $0x8] sm:$0xff]  ;;  %v187_v27 = vld [vmem:[%s844_s9 + $0x18] sm:$0xff]  ;;  %s657_s17 = smov [#allocation10]   ;;  %s428_s19 = sshll.u32 %s848_s13, 4  ;;  %vm419_vm10 = vcmask 254976   ;;  %s429_s19 = int_to_ptr.hbm [resolvable:$true] %s428_s19 }
  0x19   :  { %134 = vmatpush.msra.mxu0 %v111_v4  ;;  %173 = vmatpush.msra.mxu1 %v145_v5  ;;  %v107_v11 = vld [vmem:[#allocation2] sm:$0x3]  ;;  %v186_v28 = vld [vmem:[%s844_s9 + $0x10] sm:$0xff]  ;;  %v185_v29 = vld [vmem:[%s844_s9 + $0x8] sm:$0xff]  ;;  %s426_s7 = sshll.u32 %s657_s17, 4  ;;  %s427_s7 = int_to_ptr.vmem [resolvable:$true] %s426_s7 }
  0x1a   :  { %v481_v13 = vld [vmem:[%s843_s8] ss:$0 sm:$0xff]  ;;  %210 = vmatpush.msra.mxu2 %v187_v27  ;;  %v182_v33 = vld [vmem:[#allocation5] sm:$0xff]  ;;  %v183_v37 = vld [vmem:[#allocation5 + $0x8] sm:$0xff] }
  0x1b   :  { %135 = vmatpush.msra.mxu0 %v110_v6  ;;  %174 = vmatpush.msra.mxu1 %v144_v7  ;;  %v482_v16 = vld [vmem:[%s841_s6] ss:$0 sm:$0xff]  ;;  %v388_v3 = vld [vmem:[#allocation8 + $0x18] sm:$0xff]  ;;  %v387_v4 = vld [vmem:[#allocation8 + $0x10] sm:$0xff] }
  0x1c   :  { %459 = vmatmul.msk.f32.vlgmr.msra.gmra.mxu1 %vm152_vm0, %v142_v8  ;;  %211 = vmatpush.msra.mxu2 %v186_v28  ;;  %v282_v30 = vld [vmem:[%s838_s3] sm:$0x3]  ;;  %v385_v6 = vld [vmem:[#allocation8] sm:$0xff] }
  0x1d   :  { %136 = vmatpush.msra.mxu0 %v109_v9  ;;  %v184_v31 = vld [vmem:[%s844_s9] sm:$0xff]  ;;  %v284_v32 = vrot.slane %v282_v30, 1  ;;  %vm286_vm3 = vcmp.eq.f32.partialorder %v282_v30, 0.0  ;;  %411 = vmatpush.msrb.mxu1 %v388_v3 }
  0x1e   :  { %212 = vmatpush.msra.mxu2 %v185_v29  ;;  %v288_v39 = vsel %vm286_vm3, 1, %v653_v34  ;;  %v483_v46 = vld [vmem:[%s845_s10] ss:$0 sm:$0xff]  ;;  %s654_s10 = smov [#allocation11]  }
  0x1f   :  { %137 = vmatpush.msra.mxu0 %v108_v10  ;;  %vm287_vm2 = vcmp.eq.f32.partialorder %v284_v32, 0.0  ;;  %v290_v40 = vperm.slane %v288_v39, 0  ;;  %412 = vmatpush.msrb.mxu1 %v387_v4  ;;  %v386_v5 = vld [vmem:[#allocation8 + $0x8] sm:$0xff]  ;;  %s436_s2 = sshll.u32 %s654_s10, 4  ;;  %s437_s2 = int_to_ptr.vmem [resolvable:$true] %s436_s2 }
  0x20   :  { %458 = vmatmul.msk.f32.vlgmr.msra.gmra.mxu0 %vm118_vm1, %v107_v11  ;;  %213 = vmatpush.msra.mxu2 %v184_v31  ;;  %v289_v35 = vsel %vm287_vm2, 1, %v653_v34 }
  0x21   :  { %461 = vmatmul.msk.f32.vlgmr.msra.gmra.mxu2 %vm152_vm0, %v182_v33  ;;  %v291_v38 = vperm.slane %v289_v35, 0  ;;  %vm292_vm6 = vcmp.eq.s32.totalorder %v290_v40, 1  ;;  %413 = vmatpush.msrb.mxu1 %v386_v5 }
  0x23   :  { %vm293_vm4 = vcmp.eq.s32.totalorder %v291_v38, 1  ;;  %414 = vmatpush.msrb.mxu1 %v385_v6 }
  0x24   :  { %460 = vmatmul.msk.f32.gmra.mxu1 %vm152_vm0, %v143_v12 }
  0x29   :  { %462 = vmatmul.msk.f32.gmra.mxu2 %vm152_vm0, %v183_v37 }
  0x99   :  { %v176_v14 = vpop.f32.mrf.mxu1 }
  0x9a   :  { %v177_v15 = vadd.f32 %v481_v13, %v176_v14 }
  0x9c   :  { %463 = vmatpush.xpose.msk.msra.mxu3 %vm152_vm0, %v177_v15 }
  0x9d   :  { %v139_v17 = vpop.f32.mrf.mxu0 }
  0x9e   :  { %v140_v18 = vadd.f32 %v482_v16, %v139_v17 }
  0xa0   :  { %v224_v20 = vperm.slane %v140_v18, 0  ;;  %v223_v22 = vrot.slane %v140_v18, 1 }
  0xa1   :  { %v179_v21 = vpop.f32.mrf.mxu1 }
  0xa2   :  { %v180_v23 = vadd.f32 %v481_v13, %v179_v21  ;;  %v228_v24 = vmul.f32 %v224_v20, %v790_v19  ;;  %v225_v25 = vperm.slane %v223_v22, 0 }
  0xa4   :  { %464 = vmatmul.msk.f32.vlgmr.msra.gmra.mxu3 %vm152_vm0, %v228_v24  ;;  %v229_v26 = vmul.f32 %v225_v25, %v790_v19  ;;  %v215_v48 = vpop.f32.mrf.mxu2 }
  0xa5   :  { %465 = vmatpush.xpose.msk.msrb.mxu3 %vm152_vm0, %v180_v23  ;;  %v216_v50 = vadd.f32 %v483_v46, %v215_v48 }
  0xa7   :  { %340 = vmatpush.msrb.mxu0 %v216_v50 }
  0xac   :  { %466 = vmatmul.msk.f32.vlgmr.msrb.gmra.mxu3 %vm152_vm0, %v229_v26  ;;  %v218_v59 = vpop.f32.mrf.mxu2 }
  0xad   :  { %v219_v60 = vadd.f32 %v483_v46, %v218_v59 }
  0xaf   :  { %363 = vmatpush.msra.mxu3 %v219_v60 }
 0x127   :  { %v253_v36 = vpop.f32.mrf.mxu3 }
 0x128   :  { %v294_v44 = vsel %vm292_vm6, -1e+09, %v253_v36 }
 0x129   :  { %v297_v45 = vsel %vm296_vm5, %v294_v44, -inf }
 0x12f   :  { %v279_v41 = vpop.f32.mrf.mxu3 }
 0x130   :  { %v295_v42 = vsel %vm293_vm4, -1e+09, %v279_v41 }
 0x131   :  { %v300_v43 = vsel %vm296_vm5, %v295_v42, -inf }
 0x132   :  { %301 = vmax.xlane.f32.xlu0 %v300_v43 }
 0x13a   :  { %298 = vmax.xlane.f32.xlu0 %v297_v45 }
 0x1a5   :  { %v302_v47 = vpop.xlane.xlu0 %301 }
 0x1a6   :  { %v304_v49 = vsub.f32 %v295_v42, %v302_v47 }
 0x1a8   :  { %v307_v51 = vmul.f32 1.442695, %v304_v49 }
 0x1aa   :  { %485 = vpow2.f32 %v307_v51 }
 0x1ad   :  { %v299_v52 = vpop.xlane.xlu0 %298 }
 0x1ae   :  { %v303_v53 = vsub.f32 %v294_v44, %v299_v52 }
 0x1b0   :  { %v486_v54 = vpop.eup %485  ;;  %v305_v55 = vmul.f32 1.442695, %v303_v53 }
 0x1b1   :  { %v312_v56 = vsel %vm296_vm5, %v486_v54, 0.0 }
 0x1b2   :  { %487 = vpow2.f32 %v305_v55  ;;  %313 = vadd.xlane.f32.xlu1 %v312_v56 }
 0x1b8   :  { %v488_v57 = vpop.eup %487 }
 0x1b9   :  { %v309_v58 = vsel %vm296_vm5, %v488_v57, 0.0 }
 0x1ba   :  { %310 = vadd.xlane.f32.xlu1 %v309_v58 }
 0x225   :  { %v314_v61 = vpop.xlane.xlu1 %313 }
 0x226   :  { %489 = vrcp.f32 %v314_v61 }
 0x22c   :  { %v490_v62 = vpop.eup %489 }
 0x22d   :  { %v318_v63 = vmul.f32 %v490_v62, %v486_v54  ;;  %v311_v0 = vpop.xlane.xlu1 %310 }
 0x22e   :  { %491 = vrcp.f32 %v311_v0 }
 0x22f   :  { %320 = vst.msk [vmem:[#allocation11 + $0x4] sm:$0xf] %vm296_vm5, %v318_v63  ;;  %468 = vmatmul.msk.f32.vlgmr.msra.gmra.mxu3 %vm321_vm7, %v318_v63 }
 0x234   :  { %v492_v1 = vpop.eup %491 }
 0x235   :  { %v317_v2 = vmul.f32 %v492_v1, %v488_v57 }
 0x237   :  { %319 = vst.msk [vmem:[#allocation11] sm:$0xf] %vm296_vm5, %v317_v2  ;;  %467 = vmatmul.msk.f32.vlgmr.msrb.gmra.mxu0 %vm321_vm7, %v317_v2 }
 0x238   :  { %444 = dma.vmem_to_hbm [thread:$0]  %s437_s2, 128, %s439_s30, [#allocation12], %s655_s16, %s655_s16, %s656_s0  }
 0x2b2   :  { %v365_v7 = vpop.f32.mrf.mxu3 }
 0x2b3   :  { %v369_v8 = vmul.f32 %v365_v7, %v790_v19 }
 0x2b4   :  { %v342_v9 = vpop.f32.mrf.mxu0 }
 0x2b5   :  { %v378_v10 = vsel %vm370_vm8, %v369_v8, 0.0  ;;  %v368_v11 = vmul.f32 %v342_v9, %v790_v19  ;;  %v484_v19 = vld [vmem:[%s847_s12] ss:$0 sm:$0xff] }
 0x2b6   :  { %v379_v12 = vrot.slane %v378_v10, 4 }
 0x2b7   :  { %v371_v13 = vsel %vm370_vm8, %v368_v11, 0.0 }
 0x2b8   :  { %v380_v14 = vadd.f32 %v379_v12, %v378_v10  ;;  %v372_v15 = vrot.slane %v371_v13, 4 }
 0x2ba   :  { %v381_v16 = vrot.slane %v380_v14, 2  ;;  %v373_v17 = vadd.f32 %v372_v15, %v371_v13 }
 0x2bc   :  { %v382_v18 = vadd.f32 %v381_v16, %v380_v14  ;;  %v374_v20 = vrot.slane %v373_v17, 2 }
 0x2be   :  { %v383_v21 = vrot.slane %v382_v18, 1  ;;  %v375_v22 = vadd.f32 %v374_v20, %v373_v17 }
 0x2c0   :  { %v376_v23 = vrot.slane %v375_v22, 1  ;;  %v384_v24 = vadd.f32 %v383_v21, %v382_v18 }
 0x2c2   :  { %v377_v25 = vadd.f32 %v376_v23, %v375_v22 }
 0x2c4   :  { %v396_v26 = vsel %vm395_vm9, %v384_v24, %v377_v25 }
 0x2c5   :  { %469 = vmatmul.msk.f32.vlgmr.msrb.gmra.mxu1 %vm152_vm0, %v396_v26 }
 0x342   :  { %v416_v27 = vpop.f32.mrf.mxu1 }
 0x343   :  { %v417_v28 = vadd.f32 %v484_v19, %v416_v27 }
 0x345   :  { %420 = vst.msk [vmem:[#allocation10] sm:$0x3] %vm419_vm10, %v417_v28 }
 0x346   :  { %431 = dma.vmem_to_hbm [thread:$0]  %s427_s7, 32, %s429_s19, [#allocation4]  }
 0x347   :  { %643 = dma.done.wait [#allocation4], 32  }
 0x348   :  { %644 = vsyncadd [#allocation4], 4294967264 }
 0x349   :  { %645 = dma.done.wait [#allocation12], 128  }
 0x34a   :  { %646 = vsyncadd [#allocation12], 4294967168 }
 0x34b   :  { %453 = vsyncpa [#allocation3], 1 }
 0x34c   :  { %454 = vsyncpa [#allocation6], 1 }
 0x34d   :  { %455 = vsyncpa [#allocation9], 1 }
 0x34e   :  { %456 = vsyncpa [#allocation4], 1 }
 0x34f   :  { %457 = vsyncpa [#allocation12], 1 }

</bundles_post_ra>
